<compile_context>
chip_gen: v5e
topology: v5e:2x2
jax: 0.10.0
libtpu: 0.0.40
codegen_flags: <defaults>
</compile_context>

<pallas_src>
import jax
import jax.numpy as jnp
from jax.experimental import pallas as pl
from jax.experimental.pallas import tpu as pltpu


def _round_up(n, m):
    return -(-n // m) * m


def _vmem_limit_bytes():
    """Per-generation scoped-VMEM limit: ~48 MiB on v7x (64 MiB phys), 96 MiB on v5e/v6e."""
    try:
        phys = pltpu.get_tpu_info().vmem_capacity_bytes
    except Exception:
        phys = 64 * 1024 * 1024  # assume the smallest (v7x-like) VMEM if unknown
    return int(min(phys * 3 // 4, 96 * 1024 * 1024))


def _pick_batch_tile(B, tb_vmem_cap, need_multiple_of_8):
    """Batch tile that fits VMEM, keeps >= ~8 grid steps for large B, and respects
    the sublane rule when the batch is the second-to-last block dim."""
    tb_vmem_cap = max(1, int(tb_vmem_cap))
    tb = B if tb_vmem_cap >= B else tb_vmem_cap
    if B >= 16:
        # enough grid steps for DMA/compute overlap and both v7x TensorCores
        tb = min(tb, max(1, pl.cdiv(B, 8)))
    if need_multiple_of_8 and tb != B:
        tb = max(8, (tb // 8) * 8)
        if tb >= B:
            tb = B
    return max(1, min(tb, B))


# ---------------------------------------------------------------------------
# Kernels
# ---------------------------------------------------------------------------

def _shrinkage_flat_kernel(x_ref, segm_ref, segb_ref, w1_ref, b1_ref, w2_ref, b2_ref, o_ref):
    x = x_ref[...]                                     # (tb, C*L), lane-dense, input dtype
    xa = jnp.abs(x)

    # gap(|x|) per channel: segment-sum matmul keeps the layout lane-dense.
    avg = jnp.dot(xa.astype(jnp.float32), segm_ref[...],
                  preferred_element_type=jnp.float32)  # (tb, C)

    # fc: Linear (+ folded eval BatchNorm) -> ReLU -> Linear -> Sigmoid
    h = jnp.dot(avg, w1_ref[...], preferred_element_type=jnp.float32) + b1_ref[...]
    h = jnp.maximum(h, 0.0)
    h = jnp.dot(h, w2_ref[...], preferred_element_type=jnp.float32) + b2_ref[...]
    s = jax.nn.sigmoid(h)                              # EUP transcendental
    thr = avg * s                                      # (tb, C)

    # Broadcast the per-channel threshold back over L lanes with a 0/1 matmul.
    thr_flat = jnp.dot(thr, segb_ref[...],
                       preferred_element_type=jnp.float32).astype(x.dtype)  # (tb, C*L)

    n_sub = jnp.maximum(xa - thr_flat, 0)
    # sign(x) * n_sub == where(x >= 0, n_sub, -n_sub)   (n_sub == 0 when x == 0)
    o_ref[...] = jnp.where(x >= 0, n_sub, -n_sub).astype(o_ref.dtype)


def _shrinkage_3d_kernel(x_ref, w1_ref, b1_ref, w2_ref, b2_ref, o_ref):
    x = x_ref[...]                                     # (tb, C, L), L multiple of 128
    xa = jnp.abs(x)
    avg = jnp.mean(xa.astype(jnp.float32), axis=-1)    # (tb, C)

    h = jnp.dot(avg, w1_ref[...], preferred_element_type=jnp.float32) + b1_ref[...]
    h = jnp.maximum(h, 0.0)
    h = jnp.dot(h, w2_ref[...], preferred_element_type=jnp.float32) + b2_ref[...]
    s = jax.nn.sigmoid(h)

    thr = (avg * s).astype(x.dtype)[:, :, None]        # (tb, C, 1)
    n_sub = jnp.maximum(xa - thr, 0)
    o_ref[...] = jnp.where(x >= 0, n_sub, -n_sub).astype(o_ref.dtype)


# ---------------------------------------------------------------------------
# Wrapper
# ---------------------------------------------------------------------------

def shrinkage(x, w1, b1, gamma, beta, rmean, rvar, w2, b2, eps=1e-5):
    """Shrinkage forward. x: (B, C, L). BatchNorm in eval mode (running stats)."""
    B, C, L = x.shape
    itemsize = jnp.dtype(x.dtype).itemsize
    f32 = jnp.float32

    # Fold eval-mode BatchNorm1d into the first Linear.
    # torch Linear: y = x @ W.T + b, W of shape (out, in).
    # TODO(synk): training-mode (batch-statistics) BatchNorm is not implemented.
    bn_scale = gamma / jnp.sqrt(rvar + eps)
    bn_shift = beta - rmean * bn_scale
    w1t = (w1.T * bn_scale[None, :]).astype(f32)          # scale output columns
    b1f = (b1 * bn_scale + bn_shift).reshape(1, C).astype(f32)
    w2t = w2.T.astype(f32)
    b2r = b2.reshape(1, C).astype(f32)

    vmem_limit = _vmem_limit_bytes()
    headroom = 4 * 1024 * 1024

    CL = C * L
    segm_bytes = _round_up(CL, 8) * _round_up(C, 128) * 4
    segb_bytes = _round_up(C, 8) * _round_up(CL, 128) * 4
    seg_bytes = segm_bytes + segb_bytes
    # Lane-dense path whenever the NCL layout would pad L, and the segment
    # matrices stay small enough to keep resident in VMEM.
    use_flat = (L % 128 != 0) and (seg_bytes <= 8 * 1024 * 1024)

    mlp_w_bytes = 2 * _round_up(C, 8) * _round_up(C, 128) * 4 \
                + 2 * _round_up(1, 8) * _round_up(C, 128) * 4

    if use_flat:
        x_in = x.reshape(B, CL)
        # Segment matrices: mean over L (CL x C, entries 1/L) and broadcast over L (C x CL).
        ch = jnp.repeat(jnp.arange(C), L)                               # channel id per flat col
        segm = (ch[:, None] == jnp.arange(C)[None, :]).astype(f32) / L  # (CL, C)
        segb = (jnp.arange(C)[:, None] == ch[None, :]).astype(f32)      # (C, CL)

        # Padded VMEM per batch row: in+out blocks (double-buffered) + ~4 f32 temps.
        row_io = _round_up(CL, 128) * itemsize
        row_tmp = 4 * _round_up(CL, 128) * 4
        per_row = 4 * row_io + row_tmp
        budget = max(per_row, vmem_limit - seg_bytes - mlp_w_bytes - headroom)
        tb = _pick_batch_tile(B, budget // per_row, need_multiple_of_8=True)

        grid = (pl.cdiv(B, tb),)
        out_flat = pl.pallas_call(
            _shrinkage_flat_kernel,
            out_shape=jax.ShapeDtypeStruct((B, CL), x.dtype),
            grid=grid,
            in_specs=[
                pl.BlockSpec((tb, CL), lambda b: (b, 0)),   # x, lane-dense, batch-tiled
                pl.BlockSpec((CL, C), lambda b: (0, 0)),    # mean-over-L matrix, resident
                pl.BlockSpec((C, CL), lambda b: (0, 0)),    # broadcast-over-L matrix, resident
                pl.BlockSpec((C, C), lambda b: (0, 0)),     # W1^T (BN-folded)
                pl.BlockSpec((1, C), lambda b: (0, 0)),     # b1 (BN-folded)
                pl.BlockSpec((C, C), lambda b: (0, 0)),     # W2^T
                pl.BlockSpec((1, C), lambda b: (0, 0)),     # b2
            ],
            out_specs=pl.BlockSpec((tb, CL), lambda b: (b, 0)),
            compiler_params=pltpu.CompilerParams(
                dimension_semantics=("parallel",),
                vmem_limit_bytes=vmem_limit,
            ),
        )(x_in, segm, segb, w1t, b1f, w2t, b2r)
        return out_flat.reshape(B, C, L)

    # 3-D path: L is already a multiple of 128 (lane-dense as-is), or the segment
    # matrices would be too large to keep resident.
    row_io = _round_up(C, 8) * _round_up(L, 128) * itemsize
    row_tmp = 4 * _round_up(C, 8) * _round_up(L, 128) * 4
    per_row = 4 * row_io + row_tmp
    budget = max(per_row, vmem_limit - mlp_w_bytes - headroom)
    tb = _pick_batch_tile(B, budget // per_row, need_multiple_of_8=False)

    grid = (pl.cdiv(B, tb),)
    return pl.pallas_call(
        _shrinkage_3d_kernel,
        out_shape=jax.ShapeDtypeStruct((B, C, L), x.dtype),
        grid=grid,
        in_specs=[
            pl.BlockSpec((tb, C, L), lambda b: (b, 0, 0)),  # x: tiled over batch
            pl.BlockSpec((C, C), lambda b: (0, 0)),         # W1^T (BN-folded), resident
            pl.BlockSpec((1, C), lambda b: (0, 0)),         # b1 (BN-folded)
            pl.BlockSpec((C, C), lambda b: (0, 0)),         # W2^T
            pl.BlockSpec((1, C), lambda b: (0, 0)),         # b2
        ],
        out_specs=pl.BlockSpec((tb, C, L), lambda b: (b, 0, 0)),
        compiler_params=pltpu.CompilerParams(
            dimension_semantics=("parallel",),
            vmem_limit_bytes=vmem_limit,
        ),
    )(x, w1t, b1f, w2t, b2r)


# ---------------------------------------------------------------------------
# Pure-JAX reference
# ---------------------------------------------------------------------------

def shrinkage_ref(x, w1, b1, gamma, beta, rmean, rvar, w2, b2, eps=1e-5):
    x_abs = jnp.abs(x)
    avg = jnp.mean(x_abs, axis=-1)
    h = avg @ w1.T + b1
    h = (h - rmean) / jnp.sqrt(rvar + eps) * gamma + beta
    h = jnp.maximum(h, 0.0)
    h = h @ w2.T + b2
    s = jax.nn.sigmoid(h)
    thr = (avg * s)[:, :, None]
    n_sub = jnp.maximum(x_abs - thr, 0.0)
    return jnp.sign(x) * n_sub


if __name__ == "__main__":
    def make_inputs(key, B, C, L):
        ks = jax.random.split(key, 9)
        x     = jax.random.normal(ks[0], (B, C, L), dtype=jnp.float32)
        w1    = jax.random.normal(ks[1], (C, C), dtype=jnp.float32) * 0.3
        b1    = jax.random.normal(ks[2], (C,), dtype=jnp.float32) * 0.1
        w2    = jax.random.normal(ks[3], (C, C), dtype=jnp.float32) * 0.3
        b2    = jax.random.normal(ks[4], (C,), dtype=jnp.float32) * 0.1
        gamma = 1.0 + 0.1 * jax.random.normal(ks[5], (C,), dtype=jnp.float32)
        beta  = 0.1 * jax.random.normal(ks[6], (C,), dtype=jnp.float32)
        rmean = 0.1 * jax.random.normal(ks[7], (C,), dtype=jnp.float32)
        rvar  = jnp.abs(jax.random.normal(ks[8], (C,), dtype=jnp.float32)) + 0.5
        return x, w1, b1, gamma, beta, rmean, rvar, w2, b2

    # Primary small case (module-consistent shapes): lane-dense flat path.
    args = make_inputs(jax.random.PRNGKey(0), B=2, C=8, L=16)
    out = shrinkage(*args)
    jax.block_until_ready(out)
    ref = shrinkage_ref(*args)
    assert out.shape == (2, 8, 16) and out.dtype == jnp.float32
    assert jnp.allclose(out, ref, atol=1e-5, rtol=1e-5), "mismatch (flat, small B)"

    # Larger batch: exercises the multi-step grid / 8-row batch tiles on the flat path.
    args = make_inputs(jax.random.PRNGKey(1), B=32, C=8, L=16)
    out = shrinkage(*args)
    jax.block_until_ready(out)
    assert jnp.allclose(out, shrinkage_ref(*args), atol=1e-5, rtol=1e-5), "mismatch (flat, tiled)"

    # L a multiple of 128: exercises the native 3-D NCL path.
    args = make_inputs(jax.random.PRNGKey(2), B=4, C=8, L=128)
    out = shrinkage(*args)
    jax.block_until_ready(out)
    assert jnp.allclose(out, shrinkage_ref(*args), atol=1e-5, rtol=1e-5), "mismatch (3-D path)"

    print("KERNEL_OK")
</pallas_src>

<mosaic_0001>
module attributes {stable_mosaic.version = 11 : i64} {
  func.func @_shrinkage_flat_kernel(%arg0: i32, %arg1: memref<2x128xf32, #tpu.memory_space<vmem>>, %arg2: memref<128x8xf32, #tpu.memory_space<vmem>>, %arg3: memref<8x128xf32, #tpu.memory_space<vmem>>, %arg4: memref<8x8xf32, #tpu.memory_space<vmem>>, %arg5: memref<1x8xf32, #tpu.memory_space<vmem>>, %arg6: memref<8x8xf32, #tpu.memory_space<vmem>>, %arg7: memref<1x8xf32, #tpu.memory_space<vmem>>, %arg8: memref<2x128xf32, #tpu.memory_space<vmem>>) attributes {dimension_semantics = [#tpu.dimension_semantics<parallel>], iteration_bounds = array<i64: 1>, scalar_prefetch = 0 : i64, scratch_operands = 0 : i64, tpu.core_type = #tpu.core_type<tc>, window_params = [{transform_indices = @transform_0, window_bounds = array<i64: 2, 128>}, {pipeline_mode = #tpu.pipeline_mode<synchronous>, transform_indices = @transform_1, window_bounds = array<i64: 128, 8>}, {pipeline_mode = #tpu.pipeline_mode<synchronous>, transform_indices = @transform_2, window_bounds = array<i64: 8, 128>}, {pipeline_mode = #tpu.pipeline_mode<synchronous>, transform_indices = @transform_3, window_bounds = array<i64: 8, 8>}, {pipeline_mode = #tpu.pipeline_mode<synchronous>, transform_indices = @transform_4, window_bounds = array<i64: 1, 8>}, {pipeline_mode = #tpu.pipeline_mode<synchronous>, transform_indices = @transform_5, window_bounds = array<i64: 8, 8>}, {pipeline_mode = #tpu.pipeline_mode<synchronous>, transform_indices = @transform_6, window_bounds = array<i64: 1, 8>}, {transform_indices = @transform_7, window_bounds = array<i64: 2, 128>}]} {
    %c0 = arith.constant 0 : index
    %c0_0 = arith.constant 0 : index
    %0 = vector.load %arg1[%c0, %c0_0] : memref<2x128xf32, #tpu.memory_space<vmem>>, vector<2x128xf32>
    %1 = math.absf %0 : vector<2x128xf32>
    %c0_1 = arith.constant 0 : index
    %c0_2 = arith.constant 0 : index
    %2 = vector.load %arg2[%c0_1, %c0_2] : memref<128x8xf32, #tpu.memory_space<vmem>>, vector<128x8xf32>
    %cst = arith.constant dense<0.000000e+00> : vector<2x8xf32>
    %3 = tpu.matmul %1, %2, %cst {dimension_numbers = #tpu.dot_dimension_numbers<[1], [0], [0], [1], [0, 0, 1, 1], [], []>} : vector<2x128xf32>, vector<128x8xf32>, vector<2x8xf32> -> vector<2x8xf32>
    %c0_3 = arith.constant 0 : index
    %c0_4 = arith.constant 0 : index
    %4 = vector.load %arg4[%c0_3, %c0_4] : memref<8x8xf32, #tpu.memory_space<vmem>>, vector<8x8xf32>
    %cst_5 = arith.constant dense<0.000000e+00> : vector<2x8xf32>
    %5 = tpu.matmul %3, %4, %cst_5 {dimension_numbers = #tpu.dot_dimension_numbers<[1], [0], [0], [1], [0, 0, 1, 1], [], []>} : vector<2x8xf32>, vector<8x8xf32>, vector<2x8xf32> -> vector<2x8xf32>
    %c0_6 = arith.constant 0 : index
    %c0_7 = arith.constant 0 : index
    %6 = vector.load %arg5[%c0_6, %c0_7] : memref<1x8xf32, #tpu.memory_space<vmem>>, vector<1x8xf32>
    %7 = vector.broadcast %6 : vector<1x8xf32> to vector<2x8xf32>
    %8 = arith.addf %5, %7 : vector<2x8xf32>
    %cst_8 = arith.constant 0.000000e+00 : f32
    %9 = vector.broadcast %cst_8 : f32 to vector<2x8xf32>
    %10 = arith.maximumf %8, %9 : vector<2x8xf32>
    %c0_9 = arith.constant 0 : index
    %c0_10 = arith.constant 0 : index
    %11 = vector.load %arg6[%c0_9, %c0_10] : memref<8x8xf32, #tpu.memory_space<vmem>>, vector<8x8xf32>
    %cst_11 = arith.constant dense<0.000000e+00> : vector<2x8xf32>
    %12 = tpu.matmul %10, %11, %cst_11 {dimension_numbers = #tpu.dot_dimension_numbers<[1], [0], [0], [1], [0, 0, 1, 1], [], []>} : vector<2x8xf32>, vector<8x8xf32>, vector<2x8xf32> -> vector<2x8xf32>
    %c0_12 = arith.constant 0 : index
    %c0_13 = arith.constant 0 : index
    %13 = vector.load %arg7[%c0_12, %c0_13] : memref<1x8xf32, #tpu.memory_space<vmem>>, vector<1x8xf32>
    %14 = vector.broadcast %13 : vector<1x8xf32> to vector<2x8xf32>
    %15 = arith.addf %12, %14 : vector<2x8xf32>
    %16 = arith.negf %15 : vector<2x8xf32>
    %17 = math.exp %16 : vector<2x8xf32>
    %cst_14 = arith.constant 1.000000e+00 : f32
    %18 = vector.broadcast %cst_14 : f32 to vector<2x8xf32>
    %19 = arith.addf %18, %17 : vector<2x8xf32>
    %20 = arith.divf %18, %19 : vector<2x8xf32>
    %21 = arith.mulf %3, %20 : vector<2x8xf32>
    %c0_15 = arith.constant 0 : index
    %c0_16 = arith.constant 0 : index
    %22 = vector.load %arg3[%c0_15, %c0_16] : memref<8x128xf32, #tpu.memory_space<vmem>>, vector<8x128xf32>
    %cst_17 = arith.constant dense<0.000000e+00> : vector<2x128xf32>
    %23 = tpu.matmul %21, %22, %cst_17 {dimension_numbers = #tpu.dot_dimension_numbers<[1], [0], [0], [1], [0, 0, 1, 1], [], []>} : vector<2x8xf32>, vector<8x128xf32>, vector<2x128xf32> -> vector<2x128xf32>
    %24 = arith.subf %1, %23 : vector<2x128xf32>
    %cst_18 = arith.constant 0.000000e+00 : f32
    %25 = vector.broadcast %cst_18 : f32 to vector<2x128xf32>
    %26 = arith.maximumf %24, %25 : vector<2x128xf32>
    %cst_19 = arith.constant 0.000000e+00 : f32
    %27 = vector.broadcast %cst_19 : f32 to vector<2x128xf32>
    %28 = arith.cmpf oge, %0, %27 : vector<2x128xf32>
    %cst_20 = arith.constant 0.000000e+00 : f32
    %29 = vector.broadcast %cst_20 : f32 to vector<2x128xf32>
    %30 = arith.subf %29, %26 : vector<2x128xf32>
    %31 = arith.select %28, %26, %30 : vector<2x128xi1>, vector<2x128xf32>
    %c0_21 = arith.constant 0 : index
    %c0_22 = arith.constant 0 : index
    %32 = vector.load %arg8[%c0_21, %c0_22] : memref<2x128xf32, #tpu.memory_space<vmem>>, vector<2x128xf32>
    tpu.vector_store %arg8[%c0_21, %c0_22], %31 {strides = array<i32>} : memref<2x128xf32, #tpu.memory_space<vmem>>, vector<2x128xf32>,
    return
  }
  func.func @transform_0(%arg0: i32) -> (i32, i32) {
    %c0_i32 = arith.constant 0 : i32
    %c0_i32_0 = arith.constant 0 : i32
    return %arg0, %c0_i32 : i32, i32
  }
  func.func @transform_1(%arg0: i32) -> (i32, i32) {
    %c0_i32 = arith.constant 0 : i32
    %c0_i32_0 = arith.constant 0 : i32
    %c0_i32_1 = arith.constant 0 : i32
    return %c0_i32, %c0_i32_0 : i32, i32
  }
  func.func @transform_2(%arg0: i32) -> (i32, i32) {
    %c0_i32 = arith.constant 0 : i32
    %c0_i32_0 = arith.constant 0 : i32
    %c0_i32_1 = arith.constant 0 : i32
    return %c0_i32, %c0_i32_0 : i32, i32
  }
  func.func @transform_3(%arg0: i32) -> (i32, i32) {
    %c0_i32 = arith.constant 0 : i32
    %c0_i32_0 = arith.constant 0 : i32
    %c0_i32_1 = arith.constant 0 : i32
    return %c0_i32, %c0_i32_0 : i32, i32
  }
  func.func @transform_4(%arg0: i32) -> (i32, i32) {
    %c0_i32 = arith.constant 0 : i32
    %c0_i32_0 = arith.constant 0 : i32
    %c0_i32_1 = arith.constant 0 : i32
    return %c0_i32, %c0_i32_0 : i32, i32
  }
  func.func @transform_5(%arg0: i32) -> (i32, i32) {
    %c0_i32 = arith.constant 0 : i32
    %c0_i32_0 = arith.constant 0 : i32
    %c0_i32_1 = arith.constant 0 : i32
    return %c0_i32, %c0_i32_0 : i32, i32
  }
  func.func @transform_6(%arg0: i32) -> (i32, i32) {
    %c0_i32 = arith.constant 0 : i32
    %c0_i32_0 = arith.constant 0 : i32
    %c0_i32_1 = arith.constant 0 : i32
    return %c0_i32, %c0_i32_0 : i32, i32
  }
  func.func @transform_7(%arg0: i32) -> (i32, i32) {
    %c0_i32 = arith.constant 0 : i32
    %c0_i32_0 = arith.constant 0 : i32
    return %arg0, %c0_i32 : i32, i32
  }
}

</mosaic_0001>

<bundles_post_ra>
// kernel: tpu_custom_call.1
= control target key start
LH: loop header
LB: loop body
LE: loop exit
PB: predicated region body
PF: predicated region fallthrough
CT: control target
= control target key end

     0   :  { %s339_s0 = inlined_call_operand.vmem [shape: f32[2,128], index: 0, kind: input, shape index: {}]   ;;  %s340_s1 = inlined_call_operand.vmem [shape: f32[128,8], index: 1, kind: input, shape index: {}]   ;;  %s341_s2 = inlined_call_operand.vmem [shape: f32[8,128], index: 2, kind: input, shape index: {}]   ;;  %s342_s3 = inlined_call_operand.vmem [shape: f32[8,8], index: 3, kind: input, shape index: {}]   ;;  %s343_s4 = inlined_call_operand.vmem [shape: f32[1,8], index: 4, kind: input, shape index: {}]   ;;  %s344_s5 = inlined_call_operand.vmem [shape: f32[8,8], index: 5, kind: input, shape index: {}]   ;;  %s345_s6 = inlined_call_operand.vmem [shape: f32[1,8], index: 6, kind: input, shape index: {}]   ;;  %s346_s7 = inlined_call_operand.hbm [shape: f32[2,128], index: 7, kind: output, shape index: {}]  }
   0x1   :  { %v44_v0 = vld [vmem:[%s340_s1 + $0x78] sm:$0xff]  ;;  %v43_v1 = vld [vmem:[%s340_s1 + $0x70] sm:$0xff]  ;;  %v42_v2 = vld [vmem:[%s340_s1 + $0x68] sm:$0xff] }
   0x2   :  { %45 = vmatpush.msra.mxu0 %v44_v0  ;;  %v41_v3 = vld [vmem:[%s340_s1 + $0x60] sm:$0xff]  ;;  %v40_v4 = vld [vmem:[%s340_s1 + $0x58] sm:$0xff] }
   0x4   :  { %46 = vmatpush.msra.mxu0 %v43_v1 }
   0x6   :  { %47 = vmatpush.msra.mxu0 %v42_v2 }
   0x8   :  { %48 = vmatpush.msra.mxu0 %v41_v3 }
   0x9   :  { %12 = vsyncpa [#allocation3], 0  ;;  %v39_v5 = vld [vmem:[%s340_s1 + $0x50] sm:$0xff]  ;;  %v38_v6 = vld [vmem:[%s340_s1 + $0x48] sm:$0xff]  ;;  %vm70_vm0 = vcmask 64512   ;;  %s180_s19 = sshll.u32 %s346_s7, 4  ;;  %s181_s19 = int_to_ptr.hbm [resolvable:$true] %s180_s19 }
   0xa   :  { %49 = vmatpush.msra.mxu0 %v40_v4  ;;  %v37_v7 = vld [vmem:[%s340_s1 + $0x40] sm:$0xff]  ;;  %v36_v8 = vld [vmem:[%s340_s1 + $0x38] sm:$0xff]  ;;  %v35_v9 = vld [vmem:[%s340_s1 + $0x30] sm:$0xff] }
   0xb   :  { %v34_v10 = vld [vmem:[%s340_s1 + $0x28] sm:$0xff]  ;;  %v33_v11 = vld [vmem:[%s340_s1 + $0x20] sm:$0xff]  ;;  %v32_v12 = vld [vmem:[%s340_s1 + $0x18] sm:$0xff] }
   0xc   :  { %50 = vmatpush.msra.mxu0 %v39_v5  ;;  %v31_v13 = vld [vmem:[%s340_s1 + $0x10] sm:$0xff]  ;;  %v27_v14 = vld [vmem:[%s339_s0] sm:$0x3]  ;;  %v30_v15 = vld [vmem:[%s340_s1 + $0x8] sm:$0xff] }
   0xd   :  { %v29_v16 = vld [vmem:[%s340_s1] sm:$0xff]  ;;  %v28_v17 = vand.u32 2147483647, %v27_v14  ;;  %vm169_vm5 = vcmp.ge.f32.partialorder %v27_v14, 0.0 }
   0xe   :  { %51 = vmatpush.msra.mxu0 %v38_v6  ;;  %v65_v18 = vld [vmem:[%s342_s3] sm:$0xff] }
   0xf   :  { %89 = vmatpush.msra.mxu1 %v65_v18  ;;  %v95_v20 = vld [vmem:[%s344_s5] sm:$0xff] }
  0x10   :  { %52 = vmatpush.msra.mxu0 %v37_v7  ;;  %118 = vmatpush.msra.mxu2 %v95_v20  ;;  %v194_v21 = vld [vmem:[%s343_s4] ss:$0 sm:$0xff] }
  0x11   :  { %v143_v25 = vld [vmem:[%s341_s2] sm:$0xff]  ;;  %s226_s2 = smov [#allocation2]  }
  0x12   :  { %53 = vmatpush.msra.mxu0 %v36_v8  ;;  %162 = vmatpush.msra.mxu3 %v143_v25  ;;  %v195_v26 = vld [vmem:[%s345_s6] ss:$0 sm:$0xff]  ;;  %s178_s4 = sshll.u32 %s226_s2, 4  ;;  %s179_s4 = int_to_ptr.vmem [resolvable:$true] %s178_s4 }
  0x14   :  { %54 = vmatpush.msra.mxu0 %v35_v9 }
  0x16   :  { %55 = vmatpush.msra.mxu0 %v34_v10 }
  0x18   :  { %56 = vmatpush.msra.mxu0 %v33_v11 }
  0x1a   :  { %57 = vmatpush.msra.mxu0 %v32_v12 }
  0x1c   :  { %58 = vmatpush.msra.mxu0 %v31_v13 }
  0x1e   :  { %59 = vmatpush.msra.mxu0 %v30_v15 }
  0x20   :  { %60 = vmatpush.msra.mxu0 %v29_v16 }
  0x21   :  { %61 = vmatmul.f32.vlgmr.msra.gmra.mxu0 %v28_v17 }
  0x9e   :  { %v62_v19 = vpop.f32.mrf.mxu0 }
  0x9f   :  { %189 = vmatmul.msk.f32.vlgmr.msra.gmra.mxu1 %vm70_vm0, %v62_v19 }
 0x11c   :  { %v91_v22 = vpop.f32.mrf.mxu1 }
 0x11d   :  { %v92_v23 = vadd.f32 %v194_v21, %v91_v22 }
 0x11f   :  { %v94_v24 = vmax.f32 %v92_v23, 0.0 }
 0x121   :  { %190 = vmatmul.msk.f32.vlgmr.msra.gmra.mxu2 %vm70_vm0, %v94_v24 }
 0x1a4   :  { %v120_v27 = vpop.f32.mrf.mxu2 }
 0x1a5   :  { %v121_v28 = vadd.f32 %v195_v26, %v120_v27 }
 0x1a7   :  { %v191_v29 = vmul.f32 -1.442695, %v121_v28 }
 0x1a9   :  { %196 = vpow2.f32 %v191_v29 }
 0x1af   :  { %v197_v30 = vpop.eup %196 }
 0x1b0   :  { %v126_v31 = vadd.f32 1.0, %v197_v30 }
 0x1b2   :  { %198 = vrcp.f32 %v126_v31  ;;  %v138_v35 = vand.u32 2147483648, %v126_v31  ;;  %v136_v37 = vand.u32 2147483647, %v126_v31  ;;  %vm132_vm2 = vweird.f32 %v126_v31 }
 0x1b4   :  { %v139_v39 = vor.u32 1.1754944e-38, %v138_v35  ;;  %vm137_vm4 = vcmp.eq.f32.partialorder %v136_v37, 8.507059e+37 }
 0x1b8   :  { %v199_v32 = vpop.eup %198 }
 0x1b9   :  { %v128_v33 = vmul.f32 %v199_v32, %v126_v31  ;;  %vm133_vm1 = vweird.f32 %v199_v32 }
 0x1ba   :  { %vm134_vm3 = vmor %vm132_vm2, %vm133_vm1 }
 0x1bb   :  { %v129_v34 = vsub.f32 1.0, %v128_v33 }
 0x1bd   :  { %v130_v36 = vmul.f32 %v199_v32, %v129_v34 }
 0x1bf   :  { %v131_v38 = vadd.f32 %v199_v32, %v130_v36 }
 0x1c1   :  { %v135_v40 = vsel %vm134_vm3, %v199_v32, %v131_v38 }
 0x1c2   :  { %v140_v41 = vsel %vm137_vm4, %v139_v39, %v135_v40 }
 0x1c3   :  { %v142_v42 = vmul.f32 %v140_v41, %v62_v19 }
 0x1c5   :  { %192 = vmatmul.msk.f32.vlgmr.msra.gmra.mxu3 %vm70_vm0, %v142_v42 }
 0x248   :  { %v164_v43 = vpop.f32.mrf.mxu3 }
 0x249   :  { %v167_v44 = vsub.f32 %v28_v17, %v164_v43 }
 0x24b   :  { %v168_v45 = vmax.f32 %v167_v44, 0.0 }
 0x24d   :  { %v170_v46 = vsub.f32 0.0, %v168_v45 }
 0x24f   :  { %v171_v47 = vsel %vm169_vm5, %v168_v45, %v170_v46 }
 0x250   :  { %172 = vst [vmem:[#allocation2] sm:$0x3] %v171_v47 }
 0x251   :  { %183 = dma.vmem_to_hbm [thread:$0]  %s179_s4, 32, %s181_s19, [#allocation3]  }
 0x252   :  { %224 = dma.done.wait [#allocation3], 32  }
 0x253   :  { %225 = vsyncadd [#allocation3], 4294967264 }
 0x254   :  { %188 = vsyncpa [#allocation3], 1 }

</bundles_post_ra>
